<compile_context>
chip_gen: v7x
topology: tpu7x:2x2x1
jax: 0.10.0
libtpu: 0.0.40
codegen_flags: <defaults>
</compile_context>

<pallas_src>
import jax
import jax.numpy as jnp
from jax.experimental import pallas as pl
from jax.experimental.pallas import tpu as pltpu


def _round_up(x, m):
    return ((x + m - 1) // m) * m


def mlp_kernel(xt_ref, w1_ref, b1_ref, w2_ref, b2_ref, w3_ref, b3_ref, o_ref):
    """One batch tile of the 3-layer MLP, transposed (features, batch) layout.

    xt_ref : (D_in, TB)   bf16   input tile (batch along lanes)
    w1_ref : (128, D_in)  bf16
    b1_ref : (128, 1)     f32
    w2_ref : (64, 128)    bf16
    b2_ref : (64, 1)      f32
    w3_ref : (64, D_out)  f32
    b3_ref : (D_out, 1)   f32
    o_ref  : (D_out, TB)  f32
    """
    # fc1 + relu -- bf16 MXU matmul, f32 accumulation, f32 elementwise
    h1 = jnp.dot(w1_ref[...], xt_ref[...], preferred_element_type=jnp.float32)
    h1 = jnp.maximum(h1 + b1_ref[...], 0.0)                  # (128, TB) f32
    # fc2 + relu
    h2 = jnp.dot(w2_ref[...], h1.astype(jnp.bfloat16),
                 preferred_element_type=jnp.float32)
    h2 = jnp.maximum(h2 + b2_ref[...], 0.0)                  # (64, TB) f32
    # fc3 + sigmoid
    d_out = o_ref.shape[0]
    if d_out == 1:
        # Tiny head: broadcast-multiply (VPU) + sublane reduce (XLU) instead of
        # occupying the MXU for a single useful output row.
        z = jnp.sum(h2 * w3_ref[...], axis=0, keepdims=True)  # (1, TB)
    else:
        # Contract the feature axis of both operands -> (D_out, TB), lane-dense.
        z = jax.lax.dot_general(w3_ref[...], h2, (((0,), (0,)), ((), ())),
                                preferred_element_type=jnp.float32)
    o_ref[...] = jax.nn.sigmoid(z + b3_ref[...])


def mlp_forward(x, params, *, tile_b=512):
    w1, b1 = params["w1"], params["b1"]   # (128, D_in), (128,)
    w2, b2 = params["w2"], params["b2"]   # (64, 128),  (64,)
    w3, b3 = params["w3"], params["b3"]   # (D_out, 64), (D_out,)

    B, D_in = x.shape
    H1, H2 = w1.shape[0], w2.shape[0]
    D_out = w3.shape[0]

    # Batch is tiled along the lane dimension: tile must be a multiple of 128
    # (512 default = multiple of 256, fills v6e/v7x MXU and fits v7x VMEM).
    # Small batches are padded up to a single 128-lane tile.
    tb = tile_b if B >= tile_b else _round_up(B, 128)
    bp = _round_up(B, tb)
    grid = bp // tb

    # Layout plumbing outside the kernel: pad + transpose x so batch is the
    # last (lane) axis; cast the streaming input and the big weights to bf16
    # (halves x DMA bytes, enables full-rate MXU).
    xt = jnp.zeros((D_in, bp), jnp.bfloat16).at[:, :B].set(
        x.astype(jnp.bfloat16).T)
    w1b = w1.astype(jnp.bfloat16)
    w2b = w2.astype(jnp.bfloat16)
    w3c = w3.T.astype(jnp.float32)                 # (H2, D_out) column layout
    b1c = b1.reshape(H1, 1).astype(jnp.float32)
    b2c = b2.reshape(H2, 1).astype(jnp.float32)
    b3c = b3.reshape(D_out, 1).astype(jnp.float32)

    out_t = pl.pallas_call(
        mlp_kernel,
        out_shape=jax.ShapeDtypeStruct((D_out, bp), jnp.float32),
        grid=(grid,),
        in_specs=[
            pl.BlockSpec((D_in, tb), lambda i: (0, i)),    # x^T tile over batch
            pl.BlockSpec((H1, D_in), lambda i: (0, 0)),    # w1 (VMEM-resident)
            pl.BlockSpec((H1, 1), lambda i: (0, 0)),       # b1
            pl.BlockSpec((H2, H1), lambda i: (0, 0)),      # w2
            pl.BlockSpec((H2, 1), lambda i: (0, 0)),       # b2
            pl.BlockSpec((H2, D_out), lambda i: (0, 0)),   # w3 (column layout)
            pl.BlockSpec((D_out, 1), lambda i: (0, 0)),    # b3
        ],
        out_specs=pl.BlockSpec((D_out, tb), lambda i: (0, i)),  # lane-dense out
        compiler_params=pltpu.CompilerParams(
            # independent batch tiles -> megacore / 2-TC sharding on v7x
            dimension_semantics=("parallel",)),
    )(xt, w1b, b1c, w2b, b2c, w3c, b3c)

    # back to (B, D_out), then mirror torch's x.squeeze()
    out = out_t[:, :B].T
    return jnp.squeeze(out)


def init_params(key, input_dim, output_dim):
    ks = jax.random.split(key, 6)

    def lin(k, fan_out, fan_in):
        bound = 1.0 / (fan_in ** 0.5)
        return jax.random.uniform(k, (fan_out, fan_in), jnp.float32,
                                  -bound, bound)

    return {
        "w1": lin(ks[0], 128, input_dim),
        "b1": jax.random.uniform(ks[1], (128,), jnp.float32, -0.1, 0.1),
        "w2": lin(ks[2], 64, 128),
        "b2": jax.random.uniform(ks[3], (64,), jnp.float32, -0.1, 0.1),
        "w3": lin(ks[4], output_dim, 64),
        "b3": jax.random.uniform(ks[5], (output_dim,), jnp.float32, -0.1, 0.1),
    }


def mlp_reference(x, params):
    h1 = jnp.maximum(x @ params["w1"].T + params["b1"], 0.0)
    h2 = jnp.maximum(h1 @ params["w2"].T + params["b2"], 0.0)
    z = h2 @ params["w3"].T + params["b3"]
    return jnp.squeeze(jax.nn.sigmoid(z))


if __name__ == "__main__":
    input_dim = 32
    output_dim = 1
    batch = 8

    key = jax.random.PRNGKey(0)
    kx, kp = jax.random.split(key)
    x = jax.random.normal(kx, (batch, input_dim), jnp.float32)
    params = init_params(kp, input_dim, output_dim)

    out = mlp_forward(x, params)
    out = jax.block_until_ready(out)

    ref = mlp_reference(x, params)
    assert out.shape == ref.shape == (batch,)
    # bf16 MXU inputs with f32 accumulation -> looser tolerance than pure f32
    err = float(jnp.max(jnp.abs(out - ref)))
    assert jnp.allclose(out, ref, atol=2e-2, rtol=2e-2), err

    print("KERNEL_OK")
</pallas_src>

<mosaic_0001>
module attributes {stable_mosaic.version = 11 : i64} {
  func.func @mlp_kernel(%arg0: i32, %arg1: memref<32x128xbf16, #tpu.memory_space<vmem>>, %arg2: memref<128x32xbf16, #tpu.memory_space<vmem>>, %arg3: memref<128x1xf32, #tpu.memory_space<vmem>>, %arg4: memref<64x128xbf16, #tpu.memory_space<vmem>>, %arg5: memref<64x1xf32, #tpu.memory_space<vmem>>, %arg6: memref<64x1xf32, #tpu.memory_space<vmem>>, %arg7: memref<1x1xf32, #tpu.memory_space<vmem>>, %arg8: memref<1x128xf32, #tpu.memory_space<vmem>>) attributes {dimension_semantics = [#tpu.dimension_semantics<parallel>], iteration_bounds = array<i64: 1>, scalar_prefetch = 0 : i64, scratch_operands = 0 : i64, tpu.core_type = #tpu.core_type<tc>, window_params = [{transform_indices = @transform_0, window_bounds = array<i64: 32, 128>}, {pipeline_mode = #tpu.pipeline_mode<synchronous>, transform_indices = @transform_1, window_bounds = array<i64: 128, 32>}, {pipeline_mode = #tpu.pipeline_mode<synchronous>, transform_indices = @transform_2, window_bounds = array<i64: 128, 1>}, {pipeline_mode = #tpu.pipeline_mode<synchronous>, transform_indices = @transform_3, window_bounds = array<i64: 64, 128>}, {pipeline_mode = #tpu.pipeline_mode<synchronous>, transform_indices = @transform_4, window_bounds = array<i64: 64, 1>}, {pipeline_mode = #tpu.pipeline_mode<synchronous>, transform_indices = @transform_5, window_bounds = array<i64: 64, 1>}, {pipeline_mode = #tpu.pipeline_mode<synchronous>, transform_indices = @transform_6, window_bounds = array<i64: 1, 1>}, {transform_indices = @transform_7, window_bounds = array<i64: 1, 128>}]} {
    %c0 = arith.constant 0 : index
    %c0_0 = arith.constant 0 : index
    %0 = vector.load %arg2[%c0, %c0_0] : memref<128x32xbf16, #tpu.memory_space<vmem>>, vector<128x32xbf16>
    %c0_1 = arith.constant 0 : index
    %c0_2 = arith.constant 0 : index
    %1 = vector.load %arg1[%c0_1, %c0_2] : memref<32x128xbf16, #tpu.memory_space<vmem>>, vector<32x128xbf16>
    %cst = arith.constant dense<0.000000e+00> : vector<128x128xf32>
    %2 = tpu.matmul %0, %1, %cst {dimension_numbers = #tpu.dot_dimension_numbers<[1], [0], [0], [1], [0, 0, 1, 1], [], []>} : vector<128x32xbf16>, vector<32x128xbf16>, vector<128x128xf32> -> vector<128x128xf32>
    %c0_3 = arith.constant 0 : index
    %c0_4 = arith.constant 0 : index
    %3 = vector.load %arg3[%c0_3, %c0_4] : memref<128x1xf32, #tpu.memory_space<vmem>>, vector<128x1xf32>
    %4 = vector.broadcast %3 : vector<128x1xf32> to vector<128x128xf32>
    %5 = arith.addf %2, %4 : vector<128x128xf32>
    %cst_5 = arith.constant 0.000000e+00 : f32
    %6 = vector.broadcast %cst_5 : f32 to vector<128x128xf32>
    %7 = arith.maximumf %5, %6 : vector<128x128xf32>
    %c0_6 = arith.constant 0 : index
    %c0_7 = arith.constant 0 : index
    %8 = vector.load %arg4[%c0_6, %c0_7] : memref<64x128xbf16, #tpu.memory_space<vmem>>, vector<64x128xbf16>
    %9 = arith.truncf %7 : vector<128x128xf32> to vector<128x128xbf16>
    %cst_8 = arith.constant dense<0.000000e+00> : vector<64x128xf32>
    %10 = tpu.matmul %8, %9, %cst_8 {dimension_numbers = #tpu.dot_dimension_numbers<[1], [0], [0], [1], [0, 0, 1, 1], [], []>} : vector<64x128xbf16>, vector<128x128xbf16>, vector<64x128xf32> -> vector<64x128xf32>
    %c0_9 = arith.constant 0 : index
    %c0_10 = arith.constant 0 : index
    %11 = vector.load %arg5[%c0_9, %c0_10] : memref<64x1xf32, #tpu.memory_space<vmem>>, vector<64x1xf32>
    %12 = vector.broadcast %11 : vector<64x1xf32> to vector<64x128xf32>
    %13 = arith.addf %10, %12 : vector<64x128xf32>
    %cst_11 = arith.constant 0.000000e+00 : f32
    %14 = vector.broadcast %cst_11 : f32 to vector<64x128xf32>
    %15 = arith.maximumf %13, %14 : vector<64x128xf32>
    %c0_12 = arith.constant 0 : index
    %c0_13 = arith.constant 0 : index
    %16 = vector.load %arg6[%c0_12, %c0_13] : memref<64x1xf32, #tpu.memory_space<vmem>>, vector<64x1xf32>
    %17 = vector.broadcast %16 : vector<64x1xf32> to vector<64x128xf32>
    %18 = arith.mulf %15, %17 : vector<64x128xf32>
    %cst_14 = arith.constant dense<0.000000e+00> : vector<128xf32>
    %19 = vector.multi_reduction <add>, %18, %cst_14 [0] : vector<64x128xf32> to vector<128xf32>
    %20 = vector.shape_cast %19 : vector<128xf32> to vector<1x128xf32>
    %c0_15 = arith.constant 0 : index
    %c0_16 = arith.constant 0 : index
    %21 = vector.load %arg7[%c0_15, %c0_16] : memref<1x1xf32, #tpu.memory_space<vmem>>, vector<1x1xf32>
    %22 = vector.broadcast %21 : vector<1x1xf32> to vector<1x128xf32>
    %23 = arith.addf %20, %22 : vector<1x128xf32>
    %24 = arith.negf %23 : vector<1x128xf32>
    %25 = math.exp %24 : vector<1x128xf32>
    %cst_17 = arith.constant 1.000000e+00 : f32
    %26 = vector.broadcast %cst_17 : f32 to vector<1x128xf32>
    %27 = arith.addf %26, %25 : vector<1x128xf32>
    %28 = arith.divf %26, %27 : vector<1x128xf32>
    %c0_18 = arith.constant 0 : index
    %c0_19 = arith.constant 0 : index
    %29 = vector.load %arg8[%c0_18, %c0_19] : memref<1x128xf32, #tpu.memory_space<vmem>>, vector<1x128xf32>
    tpu.vector_store %arg8[%c0_18, %c0_19], %28 {strides = array<i32>} : memref<1x128xf32, #tpu.memory_space<vmem>>, vector<1x128xf32>,
    return
  }
  func.func @transform_0(%arg0: i32) -> (i32, i32) {
    %c0_i32 = arith.constant 0 : i32
    %c0_i32_0 = arith.constant 0 : i32
    return %c0_i32, %arg0 : i32, i32
  }
  func.func @transform_1(%arg0: i32) -> (i32, i32) {
    %c0_i32 = arith.constant 0 : i32
    %c0_i32_0 = arith.constant 0 : i32
    %c0_i32_1 = arith.constant 0 : i32
    return %c0_i32, %c0_i32_0 : i32, i32
  }
  func.func @transform_2(%arg0: i32) -> (i32, i32) {
    %c0_i32 = arith.constant 0 : i32
    %c0_i32_0 = arith.constant 0 : i32
    %c0_i32_1 = arith.constant 0 : i32
    return %c0_i32, %c0_i32_0 : i32, i32
  }
  func.func @transform_3(%arg0: i32) -> (i32, i32) {
    %c0_i32 = arith.constant 0 : i32
    %c0_i32_0 = arith.constant 0 : i32
    %c0_i32_1 = arith.constant 0 : i32
    return %c0_i32, %c0_i32_0 : i32, i32
  }
  func.func @transform_4(%arg0: i32) -> (i32, i32) {
    %c0_i32 = arith.constant 0 : i32
    %c0_i32_0 = arith.constant 0 : i32
    %c0_i32_1 = arith.constant 0 : i32
    return %c0_i32, %c0_i32_0 : i32, i32
  }
  func.func @transform_5(%arg0: i32) -> (i32, i32) {
    %c0_i32 = arith.constant 0 : i32
    %c0_i32_0 = arith.constant 0 : i32
    %c0_i32_1 = arith.constant 0 : i32
    return %c0_i32, %c0_i32_0 : i32, i32
  }
  func.func @transform_6(%arg0: i32) -> (i32, i32) {
    %c0_i32 = arith.constant 0 : i32
    %c0_i32_0 = arith.constant 0 : i32
    %c0_i32_1 = arith.constant 0 : i32
    return %c0_i32, %c0_i32_0 : i32, i32
  }
  func.func @transform_7(%arg0: i32) -> (i32, i32) {
    %c0_i32 = arith.constant 0 : i32
    %c0_i32_0 = arith.constant 0 : i32
    return %c0_i32, %arg0 : i32, i32
  }
}

</mosaic_0001>

<bundles_post_ra>
// kernel: tpu_custom_call.1
= control target key start
LH: loop header
LB: loop body
LE: loop exit
PB: predicated region body
PF: predicated region fallthrough
CT: control target
= control target key end

     0   :  { %s936_s0 = inlined_call_operand.vmem [shape: bf16[32,128], index: 0, kind: input, shape index: {}]   ;;  %s937_s1 = inlined_call_operand.vmem [shape: bf16[128,32], index: 1, kind: input, shape index: {}]   ;;  %s938_s2 = inlined_call_operand.vmem [shape: f32[128,1], index: 2, kind: input, shape index: {}]   ;;  %s939_s3 = inlined_call_operand.vmem [shape: bf16[64,128], index: 3, kind: input, shape index: {}]   ;;  %s940_s4 = inlined_call_operand.vmem [shape: f32[64,1], index: 4, kind: input, shape index: {}]   ;;  %s941_s5 = inlined_call_operand.vmem [shape: f32[64,1], index: 5, kind: input, shape index: {}]   ;;  %s942_s6 = inlined_call_operand.<no memory space> [shape: f32[1,1], index: 6, kind: input, shape index: {}]   ;;  %s943_s7 = inlined_call_operand.hbm [shape: f32[1,128], index: 7, kind: output, shape index: {}]  }
   0x1   :  { %v12_v0 = vstv %s942_s6 }
   0x2   :  { %13 = vst [vmem:[#allocation2] sm:$0x1] %v12_v0 }
   0x3   :  { %v691_v1 = vld [vmem:[%s936_s0] sm:$0xff]   ;;  %vm198_vm0 = vcmask 261120   ;;  %v692_v2 = vld [vmem:[%s936_s0 + $0x8] sm:$0xff]   ;;  %v733_v4 = vmov 0   ;;  %v695_v6 = vld [vmem:[%s937_s1 + $0x10] sm:$0xff]  }
   0x4   :  { %643 = vmatprep.subr.bf16.mxu0 %v691_v1  ;;  %v693_v3 = vld [vmem:[%s937_s1] sm:$0xff]   ;;  %689 = vset.pattern.permute.xlu0 %v733_v4  ;;  %v694_v5 = vld [vmem:[%s937_s1 + $0x8] sm:$0xff]   ;;  %v52_v9 = vld [vmem:[%s938_s2 + $0x10] sm:$0xff] }
   0x5   :  { %644 = vmatpush3.bf16.msra.mxu0 %v691_v1  ;;  %690 = vset.pattern.permute.xlu1 %v733_v4  ;;  %v50_v7 = vld [vmem:[%s938_s2] sm:$0xff]  ;;  %v51_v8 = vld [vmem:[%s938_s2 + $0x8] sm:$0xff]  ;;  %v53_v10 = vld [vmem:[%s938_s2 + $0x18] sm:$0xff] }
   0x6   :  { %645 = vmatprep.subr.bf16.mxu0 %v692_v2  ;;  %647 = vmatprep.mubr.msk.bf16.mxu0 %vm198_vm0, %v693_v3  ;;  %v696_v11 = vld [vmem:[%s937_s1 + $0x18] sm:$0xff]   ;;  %v54_v12 = vld [vmem:[%s938_s2 + $0x20] sm:$0xff]  ;;  %v55_v14 = vld [vmem:[%s938_s2 + $0x28] sm:$0xff] }
   0x7   :  { %68 = vperm.xlu0 %689, %v50_v7   ;;  %78 = vperm.xlu1 %690, %v52_v9   ;;  %v697_v13 = vld [vmem:[%s937_s1 + $0x20] sm:$0xff]   ;;  %v56_v15 = vld [vmem:[%s938_s2 + $0x30] sm:$0xff]  ;;  %v698_v16 = vld [vmem:[%s937_s1 + $0x28] sm:$0xff]  }
   0x8   :  { %v58_v17 = vld [vmem:[%s938_s2 + $0x40] sm:$0xff]  ;;  %v57_v18 = vld [vmem:[%s938_s2 + $0x38] sm:$0xff]  ;;  %v699_v19 = vld [vmem:[%s937_s1 + $0x30] sm:$0xff]  }
   0x9   :  { %646 = vmatpush3.bf16.msra.mxu0 %v692_v2 }
   0xb   :  { %73 = vperm.xlu0 %689, %v51_v8   ;;  %83 = vperm.xlu1 %690, %v53_v10  }
   0xc   :  { %648 = vmatmul.mubr.msk.bf16.vlgmr.msra.gmra.mrb[0].mxu0 %vm198_vm0, %v694_v5 }
   0xd   :  { %651 = vmatprep.mubr.msk.bf16.mxu0 %vm198_vm0, %v695_v6 }
   0xf   :  { %88 = vperm.xlu0 %689, %v54_v12   ;;  %93 = vperm.xlu1 %690, %v55_v14  }
  0x13   :  { %98 = vperm.xlu0 %689, %v56_v15   ;;  %103 = vperm.xlu1 %690, %v57_v18  }
  0x14   :  { %652 = vmatmul.mubr.msk.bf16.gmra.mrb[4].mxu0 %vm198_vm0, %v696_v11 }
  0x15   :  { %655 = vmatprep.mubr.msk.bf16.mxu0 %vm198_vm0, %v697_v13 }
  0x16   :  { %14 = vsyncpa [#allocation4], 0  ;;  %v59_v20 = vld [vmem:[%s938_s2 + $0x48] sm:$0xff]  ;;  %v60_v21 = vld [vmem:[%s938_s2 + $0x50] sm:$0xff] }
  0x17   :  { %108 = vperm.xlu0 %689, %v58_v17   ;;  %113 = vperm.xlu1 %690, %v59_v20   ;;  %v61_v22 = vld [vmem:[%s938_s2 + $0x58] sm:$0xff]  ;;  %v62_v24 = vld [vmem:[%s938_s2 + $0x60] sm:$0xff]  ;;  %v63_v25 = vld [vmem:[%s938_s2 + $0x68] sm:$0xff] }
  0x18   :  { %v700_v23 = vld [vmem:[%s937_s1 + $0x38] sm:$0xff]   ;;  %v64_v26 = vld [vmem:[%s938_s2 + $0x70] sm:$0xff]  ;;  %v352_v28 = vld [vmem:[%s940_s4] sm:$0xff] }
  0x19   :  { %v65_v27 = vld [vmem:[%s938_s2 + $0x78] sm:$0xff]  ;;  %v353_v29 = vld [vmem:[%s940_s4 + $0x8] sm:$0xff]  ;;  %v354_v30 = vld [vmem:[%s940_s4 + $0x10] sm:$0xff] }
  0x1a   :  { %v355_v31 = vld [vmem:[%s940_s4 + $0x18] sm:$0xff]  ;;  %v497_v32 = vld [vmem:[%s941_s5] sm:$0xff]  ;;  %v498_v33 = vld [vmem:[%s941_s5 + $0x8] sm:$0xff] }
  0x1b   :  { %118 = vperm.xlu0 %689, %v60_v21   ;;  %123 = vperm.xlu1 %690, %v61_v22   ;;  %v356_v34 = vld [vmem:[%s940_s4 + $0x20] sm:$0xff]  ;;  %v499_v35 = vld [vmem:[%s941_s5 + $0x10] sm:$0xff]  ;;  %v357_v36 = vld [vmem:[%s940_s4 + $0x28] sm:$0xff] }
  0x1c   :  { %656 = vmatmul.mubr.msk.bf16.gmra.mrb[8].mxu0 %vm198_vm0, %v698_v16  ;;  %v500_v37 = vld [vmem:[%s941_s5 + $0x18] sm:$0xff]  ;;  %v358_v38 = vld [vmem:[%s940_s4 + $0x30] sm:$0xff]  ;;  %v501_v39 = vld [vmem:[%s941_s5 + $0x20] sm:$0xff] }
  0x1d   :  { %659 = vmatprep.mubr.msk.bf16.mxu0 %vm198_vm0, %v699_v19  ;;  %v359_v40 = vld [vmem:[%s940_s4 + $0x38] sm:$0xff]  ;;  %v502_v41 = vld [vmem:[%s941_s5 + $0x28] sm:$0xff]  ;;  %v503_v42 = vld [vmem:[%s941_s5 + $0x30] sm:$0xff] }
  0x1e   :  { %v504_v43 = vld [vmem:[%s941_s5 + $0x38] sm:$0xff]  ;;  %v566_v44 = vld [vmem:[#allocation2] sm:$0x1] }
  0x1f   :  { %128 = vperm.xlu0 %689, %v62_v24   ;;  %133 = vperm.xlu1 %690, %v63_v25   ;;  %v701_v45 = vld [vmem:[%s939_s3] sm:$0xff]  }
  0x20   :  { %679 = vmatprep.mubr.bf16.mxu1 %v701_v45 }
  0x23   :  { %138 = vperm.xlu0 %689, %v64_v26   ;;  %143 = vperm.xlu1 %690, %v65_v27  }
  0x24   :  { %660 = vmatmul.mubr.msk.bf16.gmra.mrb[12].mxu0 %vm198_vm0, %v700_v23 }
  0x27   :  { %362 = vperm.xlu0 %689, %v352_v28   ;;  %367 = vperm.xlu1 %690, %v353_v29  }
  0x2b   :  { %372 = vperm.xlu0 %689, %v354_v30   ;;  %377 = vperm.xlu1 %690, %v355_v31  }
  0x2f   :  { %507 = vperm.xlu0 %689, %v497_v32   ;;  %512 = vperm.xlu1 %690, %v498_v33  }
  0x33   :  { %382 = vperm.xlu0 %689, %v356_v34   ;;  %517 = vperm.xlu1 %690, %v499_v35  }
  0x37   :  { %387 = vperm.xlu0 %689, %v357_v36   ;;  %522 = vperm.xlu1 %690, %v500_v37  }
  0x3b   :  { %392 = vperm.xlu0 %689, %v358_v38   ;;  %527 = vperm.xlu1 %690, %v501_v39  }
  0x3f   :  { %397 = vperm.xlu0 %689, %v359_v40   ;;  %532 = vperm.xlu1 %690, %v502_v41  }
  0x43   :  { %537 = vperm.xlu0 %689, %v503_v42   ;;  %542 = vperm.xlu1 %690, %v504_v43  }
  0x47   :  { %569 = vperm.xlu0 %689, %v566_v44  }
  0x86   :  { %v69_v46 = vpop.permute.xlu0 %68  ;;  %v79_v47 = vpop.permute.xlu1 %78 }
  0x8a   :  { %v74_v48 = vpop.permute.xlu0 %73  ;;  %v84_v49 = vpop.permute.xlu1 %83 }
  0x8e   :  { %v89_v50 = vpop.permute.xlu0 %88  ;;  %v94_v51 = vpop.permute.xlu1 %93 }
  0x92   :  { %v99_v52 = vpop.permute.xlu0 %98  ;;  %v104_v56 = vpop.permute.xlu1 %103 }
  0x96   :  { %v109_v0 = vpop.permute.xlu0 %108  ;;  %v114_v4 = vpop.permute.xlu1 %113 }
  0x9a   :  { %v119_v13 = vpop.permute.xlu0 %118  ;;  %v124_v17 = vpop.permute.xlu1 %123 }
  0x9e   :  { %v129_v25 = vpop.permute.xlu0 %128  ;;  %v134_v30 = vpop.permute.xlu1 %133 }
  0xa2   :  { %v139_v37 = vpop.permute.xlu0 %138  ;;  %v144_v42 = vpop.permute.xlu1 %143 }
  0xdf   :  { %v649_v53 = vpop.f32.mrb[0].mxu0 }
  0xe0   :  { %v266_v54 = vadd.f32 %v649_v53, %v79_v47  ;;  %v257_v55 = vpop.f32.mrb[1].mxu0 }
  0xe1   :  { %v258_v57 = vadd.f32 %v257_v55, %v69_v46  ;;  %v650_v58 = vpop.f32.mrb[2].mxu0  ;;  %v703_v55 = vld [vmem:[%s939_s3 + $0x10] sm:$0xff]  }
  0xe2   :  { %v269_v59 = vadd.f32 %v650_v58, %v84_v49  ;;  %v260_v60 = vpop.f32.mrb[3].mxu0  ;;  %v322_v62 = vmax.f32 %v266_v54, 0.0  ;;  %v702_v54 = vld [vmem:[%s939_s3 + $0x8] sm:$0xff]   ;;  %v368_v58 = vpop.permute.xlu1 %367 }
  0xe3   :  { %v261_v61 = vadd.f32 %v260_v60, %v74_v48  ;;  %v320_v1 = vmax.f32 %v258_v57, 0.0  ;;  %v363_v57 = vpop.permute.xlu0 %362 }
  0xe4   :  { %v323_v63 = vmax.f32 %v269_v59, 0.0 }
  0xe5   :  { %v321_v2 = vmax.f32 %v261_v61, 0.0 }
  0xe6   :  { %v345_v3 = vpack.c.bf16 %v323_v63, %v322_v62  ;;  %v378_v60 = vpop.permute.xlu1 %377 }
  0xe7   :  { %v653_v5 = vpop.f32.mrb[4].mxu0  ;;  %v344_v6 = vpack.c.bf16 %v321_v2, %v320_v1  ;;  %v373_v59 = vpop.permute.xlu0 %372 }
  0xe8   :  { %v282_v7 = vadd.f32 %v653_v5, %v99_v52  ;;  %v273_v8 = vpop.f32.mrb[5].mxu0 }
  0xe9   :  { %v274_v9 = vadd.f32 %v273_v8, %v89_v50  ;;  %v654_v10 = vpop.f32.mrb[6].mxu0  ;;  %663 = vmatprep.subr.bf16.mxu1 %v344_v6 }
  0xea   :  { %v285_v11 = vadd.f32 %v654_v10, %v104_v56  ;;  %v276_v12 = vpop.f32.mrb[7].mxu0  ;;  %664 = vmatpush3.bf16.msra.mxu1 %v344_v6  ;;  %v326_v15 = vmax.f32 %v282_v7, 0.0  ;;  %v704_v56 = vld [vmem:[%s939_s3 + $0x18] sm:$0xff]   ;;  %v513_v62 = vpop.permute.xlu1 %512  ;;  %s734_s3 = smov [#allocation3]  }
  0xeb   :  { %v277_v14 = vadd.f32 %v276_v12, %v94_v51  ;;  %665 = vmatprep.subr.bf16.mxu1 %v345_v3  ;;  %v324_v18 = vmax.f32 %v274_v9, 0.0  ;;  %v508_v61 = vpop.permute.xlu0 %507  ;;  %s590_s12 = sshll.u32 %s734_s3, 4  ;;  %s591_s12 = int_to_ptr.vmem [resolvable:$true] %s590_s12 }
  0xec   :  { %v327_v16 = vmax.f32 %v285_v11, 0.0  ;;  %s709_s13 = scalar_lea.vmem %s591_s12, 16  ;;  %s713_s14 = scalar_lea.vmem %s591_s12, 32 }
  0xed   :  { %v325_v19 = vmax.f32 %v277_v14, 0.0  ;;  %p710_p0 = scmp.ne.s32.totalorder %s591_s12, %s709_s13  ;;  %p714_p1 = scmp.lt.s32.totalorder %s591_s12, %s591_s12 }
  0xee   :  { %v347_v20 = vpack.c.bf16 %v327_v16, %v326_v15  ;;  %666 = vmatpush3.bf16.msra.mxu1 %v345_v3  ;;  %p715_p2 = scmp.lt.s32.totalorder %s713_s14, %s709_s13 }
  0xef   :  { %v346_v21 = vpack.c.bf16 %v325_v19, %v324_v18  ;;  %v657_v22 = vpop.f32.mrb[8].mxu0  ;;  %v383_v63 = vpop.permute.xlu0 %382 }
  0xf0   :  { %v298_v23 = vadd.f32 %v657_v22, %v119_v13  ;;  %v289_v24 = vpop.f32.mrb[9].mxu0  ;;  %p716_p3 = por %p715_p2, %p714_p1 }
  0xf1   :  { %v290_v26 = vadd.f32 %v289_v24, %v109_v0  ;;  %v658_v27 = vpop.f32.mrb[10].mxu0  ;;  %667 = vmatprep.subr.bf16.mxu1 %v346_v21  ;;  %v518_v0 = vpop.permute.xlu1 %517 }
  0xf2   :  { %v301_v28 = vadd.f32 %v658_v27, %v124_v17  ;;  %v292_v29 = vpop.f32.mrb[11].mxu0  ;;  %668 = vmatpush3.bf16.msra.mxu1 %v346_v21  ;;  %v330_v32 = vmax.f32 %v298_v23, 0.0  ;;  %p717_p4 = pnand %p716_p3, %p710_p0 }
  0xf3   :  { %v293_v31 = vadd.f32 %v292_v29, %v114_v4  ;;  %669 = vmatprep.subr.bf16.mxu1 %v347_v20  ;;  %v328_v34 = vmax.f32 %v290_v26, 0.0  ;;  %v388_v1 = vpop.permute.xlu0 %387 }
  0xf4   :  { %v331_v33 = vmax.f32 %v301_v28, 0.0 }
  0xf5   :  { %v329_v35 = vmax.f32 %v293_v31, 0.0  ;;  %v523_v3 = vpop.permute.xlu1 %522 }
  0xf6   :  { %v349_v36 = vpack.c.bf16 %v331_v33, %v330_v32  ;;  %670 = vmatpush3.bf16.msra.mxu1 %v347_v20 }
  0xf7   :  { %v348_v38 = vpack.c.bf16 %v329_v35, %v328_v34  ;;  %v661_v39 = vpop.f32.mrb[12].mxu0  ;;  %v393_v12 = vpop.permute.xlu0 %392 }
  0xf8   :  { %v314_v40 = vadd.f32 %v661_v39, %v139_v37  ;;  %v305_v41 = vpop.f32.mrb[13].mxu0 }
  0xf9   :  { %v306_v43 = vadd.f32 %v305_v41, %v129_v25  ;;  %v662_v44 = vpop.f32.mrb[14].mxu0  ;;  %671 = vmatprep.subr.bf16.mxu1 %v348_v38  ;;  %v528_v15 = vpop.permute.xlu1 %527 }
  0xfa   :  { %v317_v45 = vadd.f32 %v662_v44, %v144_v42  ;;  %v308_v46 = vpop.f32.mrb[15].mxu0  ;;  %672 = vmatpush3.bf16.msra.mxu1 %v348_v38  ;;  %v334_v48 = vmax.f32 %v314_v40, 0.0 }
  0xfb   :  { %v309_v47 = vadd.f32 %v308_v46, %v134_v30  ;;  %673 = vmatprep.subr.bf16.mxu1 %v349_v36  ;;  %v332_v50 = vmax.f32 %v306_v43, 0.0  ;;  %v398_v26 = vpop.permute.xlu0 %397 }
  0xfc   :  { %v335_v49 = vmax.f32 %v317_v45, 0.0 }
  0xfd   :  { %v333_v51 = vmax.f32 %v309_v47, 0.0  ;;  %v533_v33 = vpop.permute.xlu1 %532  ;;  %v572_v47 = vlaneseq }
  0xfe   :  { %v351_v52 = vpack.c.bf16 %v335_v49, %v334_v48  ;;  %674 = vmatpush3.bf16.msra.mxu1 %v349_v36 }
  0xff   :  { %v350_v53 = vpack.c.bf16 %v333_v51, %v332_v50  ;;  %v538_v41 = vpop.permute.xlu0 %537  ;;  %v573_v50 = vshrl.u32 %v572_v47, 7 }
 0x101   :  { %675 = vmatprep.subr.bf16.mxu1 %v350_v53  ;;  %v543_v44 = vpop.permute.xlu1 %542 }
 0x102   :  { %676 = vmatpush3.bf16.msra.mxu1 %v350_v53  ;;  %v574_v53 = vsub.s32 0, %v573_v50 }
 0x103   :  { %677 = vmatprep.subr.bf16.mxu1 %v351_v52 }
 0x106   :  { %678 = vmatpush3.bf16.msra.mxu1 %v351_v52 }
 0x109   :  { %680 = vmatmul.mubr.bf16.vlgmr.msra.gmra.mrb[0].mxu1 %v702_v54 }
 0x10a   :  { %683 = vmatprep.mubr.bf16.mxu1 %v703_v55  ;;  %v570_v55 = vpop.permute.xlu0 %569 }
 0x111   :  { %684 = vmatmul.mubr.bf16.gmra.mrb[4].mxu1 %v704_v56 }
 0x1dc   :  { %v681_v2 = vpop.f32.mrb[0].mxu1 }
 0x1dd   :  { %v458_v4 = vpop.f32.mrb[1].mxu1  ;;  %v467_v5 = vadd.f32 %v681_v2, %v373_v59 }
 0x1de   :  { %v459_v6 = vadd.f32 %v458_v4, %v363_v57  ;;  %v682_v7 = vpop.f32.mrb[2].mxu1  ;;  %v575_v57 = vrot.slane %v570_v55, %v574_v53 }
 0x1df   :  { %v470_v8 = vadd.f32 %v682_v7, %v378_v60  ;;  %v461_v9 = vpop.f32.mrb[3].mxu1  ;;  %v491_v13 = vmax.f32 %v467_v5, 0.0 }
 0x1e0   :  { %v489_v10 = vmax.f32 %v459_v6, 0.0  ;;  %v462_v11 = vadd.f32 %v461_v9, %v368_v58 }
 0x1e1   :  { %v492_v16 = vmax.f32 %v470_v8, 0.0  ;;  %v547_v21 = vmul.f32 %v518_v0, %v491_v13 }
 0x1e2   :  { %v490_v14 = vmax.f32 %v462_v11, 0.0  ;;  %v545_v17 = vmul.f32 %v508_v61, %v489_v10 }
 0x1e3   :  { %v548_v27 = vmul.f32 %v523_v3, %v492_v16 }
 0x1e4   :  { %v546_v18 = vmul.f32 %v513_v62, %v490_v14  ;;  %v685_v19 = vpop.f32.mrb[4].mxu1 }
 0x1e5   :  { %v474_v20 = vpop.f32.mrb[5].mxu1  ;;  %v483_v23 = vadd.f32 %v685_v19, %v393_v12 }
 0x1e6   :  { %v553_v22 = vadd.f32 %v546_v18, %v545_v17  ;;  %v475_v24 = vadd.f32 %v474_v20, %v383_v63  ;;  %v686_v25 = vpop.f32.mrb[6].mxu1 }
 0x1e7   :  { %v477_v28 = vpop.f32.mrb[7].mxu1  ;;  %v486_v31 = vadd.f32 %v686_v25, %v398_v26  ;;  %v495_v34 = vmax.f32 %v483_v23, 0.0 }
 0x1e8   :  { %v554_v29 = vadd.f32 %v553_v22, %v547_v21  ;;  %v493_v30 = vmax.f32 %v475_v24, 0.0  ;;  %v478_v32 = vadd.f32 %v477_v28, %v388_v1 }
 0x1e9   :  { %v496_v39 = vmax.f32 %v486_v31, 0.0  ;;  %v551_v42 = vmul.f32 %v538_v41, %v495_v34 }
 0x1ea   :  { %v549_v35 = vmul.f32 %v528_v15, %v493_v30  ;;  %v555_v36 = vadd.f32 %v554_v29, %v548_v27  ;;  %v494_v37 = vmax.f32 %v478_v32, 0.0 }
 0x1eb   :  { %v552_v45 = vmul.f32 %v543_v44, %v496_v39 }
 0x1ec   :  { %v556_v38 = vadd.f32 %v555_v36, %v549_v35  ;;  %v550_v40 = vmul.f32 %v533_v33, %v494_v37 }
 0x1ee   :  { %v557_v43 = vadd.f32 %v556_v38, %v550_v40 }
 0x1f0   :  { %v558_v46 = vadd.f32 %v557_v43, %v551_v42 }
 0x1f2   :  { %v559_v48 = vadd.f32 %v558_v46, %v552_v45 }
 0x1f4   :  { %v560_v49 = vrot.slane %v559_v48, 4 }
 0x1f6   :  { %v561_v51 = vadd.f32 %v560_v49, %v559_v48 }
 0x1f8   :  { %v562_v52 = vrot.slane %v561_v51, 2 }
 0x1fa   :  { %v563_v54 = vadd.f32 %v562_v52, %v561_v51 }
 0x1fc   :  { %v564_v56 = vrot.slane %v563_v54, 1 }
 0x1fe   :  { %v565_v58 = vadd.f32 %v564_v56, %v563_v54 }
 0x200   :  { %v576_v59 = vadd.f32 %v575_v57, %v565_v58 }
 0x202   :  { %v620_v60 = vmul.f32 -1.442695, %v576_v59 }
 0x204   :  { %705 = vpow2.f32 %v620_v60 }
 0x20e   :  { %v706_v61 = vpop.eup %705 }
 0x20f   :  { %v580_v62 = vadd.f32 1.0, %v706_v61 }
 0x211   :  { %707 = vrcp.f32 %v580_v62 }
 0x21b   :  { %v708_v63 = vpop.eup %707 }
 0x21c   :  { %583 = vst [vmem:[#allocation3] sm:$0x1] %v708_v63 }
 0x21d   :  { %720 = shalt.err (!%p717_p4)
}
 0x21e   :  { %s721_s17 = scalar_lea.hbm %s943_s7, 16 }
 0x21f   :  { %p722_p5 = scmp.ne.s32.totalorder %s943_s7, %s721_s17  ;;  %p725_p6 = scmp.lt.u32.totalorder %s721_s17, %s943_s7 }
 0x221   :  { %p727_p7 = pnand %p725_p6, %p722_p5 }
 0x223   :  { %730 = shalt.err (!%p727_p7)
}
 0x224   :  { %593 = dma.vmem_to_hbm [thread:$0]  %s591_s12, 16, %s943_s7, [#allocation4]  }
 0x225   :  { %731 = dma.done.wait [#allocation4], 16  }
 0x226   :  { %732 = vsyncadd [#allocation4], 4294967280 }
 0x227   :  { %597 = vsyncpa [#allocation4], 1 }

</bundles_post_ra>
